<compile_context>
chip_gen: v6e
topology: v6e:2x2x1
jax: 0.10.0
libtpu: 0.0.40
codegen_flags: <defaults>
</compile_context>

<pallas_src>
import functools

import jax
import jax.numpy as jnp
from jax.experimental import pallas as pl
from jax.experimental.pallas import tpu as pltpu

HIDDEN = 64


def _mlp_kernel(xT_ref, w1_ref, w2_ref, w3_ref, w4_ref, b_ref, o_ref):
    H = HIDDEN
    A = o_ref.shape[0]

    x = xT_ref[...]                       # (S, TB) bf16, batch on lanes

    # Merged bias buffer: rows [0:3H) are the hidden biases, [3H:3H+A) the head.
    b1 = b_ref[0 * H:1 * H, :]            # (H, 1) f32, broadcasts over batch lanes
    b2 = b_ref[1 * H:2 * H, :]
    b3 = b_ref[2 * H:3 * H, :]
    b4 = b_ref[3 * H:3 * H + A, :]        # (A, 1) f32

    # Layer 1: (H,S)@(S,TB) -> (H,TB), f32 accumulate, bias+ReLU in f32
    h = jnp.dot(w1_ref[...], x, preferred_element_type=jnp.float32) + b1
    h = jnp.maximum(h, 0.0).astype(jnp.bfloat16)
    # Layer 2
    h = jnp.dot(w2_ref[...], h, preferred_element_type=jnp.float32) + b2
    h = jnp.maximum(h, 0.0).astype(jnp.bfloat16)
    # Layer 3
    h = jnp.dot(w3_ref[...], h, preferred_element_type=jnp.float32) + b3
    h = jnp.maximum(h, 0.0).astype(jnp.bfloat16)
    # Layer 4 (no activation): lane-dense (A, TB) store
    o_ref[...] = jnp.dot(w4_ref[...], h, preferred_element_type=jnp.float32) + b4


@functools.partial(jax.jit, static_argnames=("batch_tile",))
def dqn_forward(x, params, batch_tile=512):
    """Pallas forward pass of DQNModel.

    x:      (B, state_size) float32
    params: dict with PyTorch-layout weights w1..w4 (out, in) and biases b1..b4 (out,)
    returns (B, action_size) float32 Q-values
    """
    B, S = x.shape
    H = HIDDEN
    A = params["w4"].shape[0]

    # Batch tile: multiple of 128 (lane-dense), capped at batch_tile.
    pb128 = pl.cdiv(B, 128) * 128
    tb = min(batch_tile, pb128)
    padded_B = pl.cdiv(B, tb) * tb
    grid = (padded_B // tb,)

    # Transposed activations: (S, padded_B), bf16 operands for the MXU.
    xT = jnp.transpose(x).astype(jnp.bfloat16)
    xT = jnp.pad(xT, ((0, 0), (0, padded_B - B)))

    w1 = params["w1"].astype(jnp.bfloat16)   # (H, S)
    w2 = params["w2"].astype(jnp.bfloat16)   # (H, H)
    w3 = params["w3"].astype(jnp.bfloat16)   # (H, H)
    w4 = params["w4"].astype(jnp.bfloat16)   # (A, H)

    # Single merged bias buffer (column vectors for the transposed layout).
    b_all = jnp.concatenate(
        [params["b1"], params["b2"], params["b3"], params["b4"]]
    ).astype(jnp.float32).reshape(3 * H + A, 1)

    outT = pl.pallas_call(
        _mlp_kernel,
        out_shape=jax.ShapeDtypeStruct((A, padded_B), jnp.float32),
        grid_spec=pltpu.PrefetchScalarGridSpec(
            num_scalar_prefetch=0,
            grid=grid,
            in_specs=[
                pl.BlockSpec((S, tb), lambda i: (0, i)),          # x tile (batch on lanes)
                pl.BlockSpec((H, S), lambda i: (0, 0)),           # weights stay resident
                pl.BlockSpec((H, H), lambda i: (0, 0)),
                pl.BlockSpec((H, H), lambda i: (0, 0)),
                pl.BlockSpec((A, H), lambda i: (0, 0)),
                pl.BlockSpec((3 * H + A, 1), lambda i: (0, 0)),   # merged biases
            ],
            out_specs=pl.BlockSpec((A, tb), lambda i: (0, i)),
        ),
        compiler_params=pltpu.CompilerParams(
            dimension_semantics=("parallel",),   # dual-TC sharding on v7x
        ),
    )(xT, w1, w2, w3, w4, b_all)

    # Tiny transpose back to the PyTorch-facing (B, A) layout in the wrapper.
    return outT[:, :B].T


def init_params(key, state_size, action_size):
    """PyTorch-layout init: W (out, in), b (out,), U[-1/sqrt(fan_in), +1/sqrt(fan_in)]."""
    dims = [(state_size, HIDDEN), (HIDDEN, HIDDEN), (HIDDEN, HIDDEN), (HIDDEN, action_size)]
    params = {}
    for i, (fan_in, fan_out) in enumerate(dims, start=1):
        key, kw, kb = jax.random.split(key, 3)
        bound = 1.0 / (fan_in ** 0.5)
        params[f"w{i}"] = jax.random.uniform(
            kw, (fan_out, fan_in), jnp.float32, minval=-bound, maxval=bound)
        params[f"b{i}"] = jax.random.uniform(
            kb, (fan_out,), jnp.float32, minval=-bound, maxval=bound)
    return params


def _reference_forward(x, params):
    h = jnp.maximum(x @ params["w1"].T + params["b1"], 0.0)
    h = jnp.maximum(h @ params["w2"].T + params["b2"], 0.0)
    h = jnp.maximum(h @ params["w3"].T + params["b3"], 0.0)
    return h @ params["w4"].T + params["b4"]


if __name__ == "__main__":
    STATE_SIZE = 8    # LunarLander observation dim
    ACTION_SIZE = 4   # LunarLander action dim
    BATCH = 2

    key = jax.random.PRNGKey(0)
    key, kx = jax.random.split(key)
    x = jax.random.normal(kx, (BATCH, STATE_SIZE), dtype=jnp.float32)
    params = init_params(key, STATE_SIZE, ACTION_SIZE)

    out = jax.block_until_ready(dqn_forward(x, params))
    ref = _reference_forward(x, params)

    assert out.shape == (BATCH, ACTION_SIZE), out.shape
    # bf16 matmul operands (f32 accumulate) -> loosened tolerance vs f32 reference.
    assert jnp.allclose(out, ref, atol=2e-2, rtol=2e-2), "mismatch vs reference"

    print("KERNEL_OK")
</pallas_src>

<mosaic_0001>
module attributes {stable_mosaic.version = 11 : i64} {
  func.func @_mlp_kernel(%arg0: i32, %arg1: memref<8x128xbf16, #tpu.memory_space<vmem>>, %arg2: memref<64x8xbf16, #tpu.memory_space<vmem>>, %arg3: memref<64x64xbf16, #tpu.memory_space<vmem>>, %arg4: memref<64x64xbf16, #tpu.memory_space<vmem>>, %arg5: memref<4x64xbf16, #tpu.memory_space<vmem>>, %arg6: memref<196x1xf32, #tpu.memory_space<vmem>>, %arg7: memref<4x128xf32, #tpu.memory_space<vmem>>) attributes {dimension_semantics = [#tpu.dimension_semantics<parallel>], iteration_bounds = array<i64: 1>, scalar_prefetch = 0 : i64, scratch_operands = 0 : i64, tpu.core_type = #tpu.core_type<tc>, window_params = [{transform_indices = @transform_0, window_bounds = array<i64: 8, 128>}, {pipeline_mode = #tpu.pipeline_mode<synchronous>, transform_indices = @transform_1, window_bounds = array<i64: 64, 8>}, {pipeline_mode = #tpu.pipeline_mode<synchronous>, transform_indices = @transform_2, window_bounds = array<i64: 64, 64>}, {pipeline_mode = #tpu.pipeline_mode<synchronous>, transform_indices = @transform_3, window_bounds = array<i64: 64, 64>}, {pipeline_mode = #tpu.pipeline_mode<synchronous>, transform_indices = @transform_4, window_bounds = array<i64: 4, 64>}, {pipeline_mode = #tpu.pipeline_mode<synchronous>, transform_indices = @transform_5, window_bounds = array<i64: 196, 1>}, {transform_indices = @transform_6, window_bounds = array<i64: 4, 128>}]} {
    %c0 = arith.constant 0 : index
    %c0_0 = arith.constant 0 : index
    %0 = vector.load %arg1[%c0, %c0_0] : memref<8x128xbf16, #tpu.memory_space<vmem>>, vector<8x128xbf16>
    %c0_1 = arith.constant 0 : index
    %c0_2 = arith.constant 0 : index
    %1 = vector.load %arg6[%c0_1, %c0_2] : memref<196x1xf32, #tpu.memory_space<vmem>>, vector<64x1xf32>
    %c64 = arith.constant 64 : index
    %c0_3 = arith.constant 0 : index
    %2 = vector.load %arg6[%c64, %c0_3] : memref<196x1xf32, #tpu.memory_space<vmem>>, vector<64x1xf32>
    %c128 = arith.constant 128 : index
    %c0_4 = arith.constant 0 : index
    %3 = vector.load %arg6[%c128, %c0_4] : memref<196x1xf32, #tpu.memory_space<vmem>>, vector<64x1xf32>
    %c192 = arith.constant 192 : index
    %c0_5 = arith.constant 0 : index
    %4 = vector.load %arg6[%c192, %c0_5] : memref<196x1xf32, #tpu.memory_space<vmem>>, vector<4x1xf32>
    %c0_6 = arith.constant 0 : index
    %c0_7 = arith.constant 0 : index
    %5 = vector.load %arg2[%c0_6, %c0_7] : memref<64x8xbf16, #tpu.memory_space<vmem>>, vector<64x8xbf16>
    %cst = arith.constant dense<0.000000e+00> : vector<64x128xf32>
    %6 = tpu.matmul %5, %0, %cst {dimension_numbers = #tpu.dot_dimension_numbers<[1], [0], [0], [1], [0, 0, 1, 1], [], []>} : vector<64x8xbf16>, vector<8x128xbf16>, vector<64x128xf32> -> vector<64x128xf32>
    %7 = vector.broadcast %1 : vector<64x1xf32> to vector<64x128xf32>
    %8 = arith.addf %6, %7 : vector<64x128xf32>
    %cst_8 = arith.constant 0.000000e+00 : f32
    %9 = vector.broadcast %cst_8 : f32 to vector<64x128xf32>
    %10 = arith.maximumf %8, %9 : vector<64x128xf32>
    %11 = arith.truncf %10 : vector<64x128xf32> to vector<64x128xbf16>
    %c0_9 = arith.constant 0 : index
    %c0_10 = arith.constant 0 : index
    %12 = vector.load %arg3[%c0_9, %c0_10] : memref<64x64xbf16, #tpu.memory_space<vmem>>, vector<64x64xbf16>
    %cst_11 = arith.constant dense<0.000000e+00> : vector<64x128xf32>
    %13 = tpu.matmul %12, %11, %cst_11 {dimension_numbers = #tpu.dot_dimension_numbers<[1], [0], [0], [1], [0, 0, 1, 1], [], []>} : vector<64x64xbf16>, vector<64x128xbf16>, vector<64x128xf32> -> vector<64x128xf32>
    %14 = vector.broadcast %2 : vector<64x1xf32> to vector<64x128xf32>
    %15 = arith.addf %13, %14 : vector<64x128xf32>
    %cst_12 = arith.constant 0.000000e+00 : f32
    %16 = vector.broadcast %cst_12 : f32 to vector<64x128xf32>
    %17 = arith.maximumf %15, %16 : vector<64x128xf32>
    %18 = arith.truncf %17 : vector<64x128xf32> to vector<64x128xbf16>
    %c0_13 = arith.constant 0 : index
    %c0_14 = arith.constant 0 : index
    %19 = vector.load %arg4[%c0_13, %c0_14] : memref<64x64xbf16, #tpu.memory_space<vmem>>, vector<64x64xbf16>
    %cst_15 = arith.constant dense<0.000000e+00> : vector<64x128xf32>
    %20 = tpu.matmul %19, %18, %cst_15 {dimension_numbers = #tpu.dot_dimension_numbers<[1], [0], [0], [1], [0, 0, 1, 1], [], []>} : vector<64x64xbf16>, vector<64x128xbf16>, vector<64x128xf32> -> vector<64x128xf32>
    %21 = vector.broadcast %3 : vector<64x1xf32> to vector<64x128xf32>
    %22 = arith.addf %20, %21 : vector<64x128xf32>
    %cst_16 = arith.constant 0.000000e+00 : f32
    %23 = vector.broadcast %cst_16 : f32 to vector<64x128xf32>
    %24 = arith.maximumf %22, %23 : vector<64x128xf32>
    %25 = arith.truncf %24 : vector<64x128xf32> to vector<64x128xbf16>
    %c0_17 = arith.constant 0 : index
    %c0_18 = arith.constant 0 : index
    %26 = vector.load %arg5[%c0_17, %c0_18] : memref<4x64xbf16, #tpu.memory_space<vmem>>, vector<4x64xbf16>
    %cst_19 = arith.constant dense<0.000000e+00> : vector<4x128xf32>
    %27 = tpu.matmul %26, %25, %cst_19 {dimension_numbers = #tpu.dot_dimension_numbers<[1], [0], [0], [1], [0, 0, 1, 1], [], []>} : vector<4x64xbf16>, vector<64x128xbf16>, vector<4x128xf32> -> vector<4x128xf32>
    %28 = vector.broadcast %4 : vector<4x1xf32> to vector<4x128xf32>
    %29 = arith.addf %27, %28 : vector<4x128xf32>
    %c0_20 = arith.constant 0 : index
    %c0_21 = arith.constant 0 : index
    %30 = vector.load %arg7[%c0_20, %c0_21] : memref<4x128xf32, #tpu.memory_space<vmem>>, vector<4x128xf32>
    tpu.vector_store %arg7[%c0_20, %c0_21], %29 {strides = array<i32>} : memref<4x128xf32, #tpu.memory_space<vmem>>, vector<4x128xf32>,
    return
  }
  func.func @transform_0(%arg0: i32) -> (i32, i32) {
    %c0_i32 = arith.constant 0 : i32
    %c0_i32_0 = arith.constant 0 : i32
    return %c0_i32, %arg0 : i32, i32
  }
  func.func @transform_1(%arg0: i32) -> (i32, i32) {
    %c0_i32 = arith.constant 0 : i32
    %c0_i32_0 = arith.constant 0 : i32
    %c0_i32_1 = arith.constant 0 : i32
    return %c0_i32, %c0_i32_0 : i32, i32
  }
  func.func @transform_2(%arg0: i32) -> (i32, i32) {
    %c0_i32 = arith.constant 0 : i32
    %c0_i32_0 = arith.constant 0 : i32
    %c0_i32_1 = arith.constant 0 : i32
    return %c0_i32, %c0_i32_0 : i32, i32
  }
  func.func @transform_3(%arg0: i32) -> (i32, i32) {
    %c0_i32 = arith.constant 0 : i32
    %c0_i32_0 = arith.constant 0 : i32
    %c0_i32_1 = arith.constant 0 : i32
    return %c0_i32, %c0_i32_0 : i32, i32
  }
  func.func @transform_4(%arg0: i32) -> (i32, i32) {
    %c0_i32 = arith.constant 0 : i32
    %c0_i32_0 = arith.constant 0 : i32
    %c0_i32_1 = arith.constant 0 : i32
    return %c0_i32, %c0_i32_0 : i32, i32
  }
  func.func @transform_5(%arg0: i32) -> (i32, i32) {
    %c0_i32 = arith.constant 0 : i32
    %c0_i32_0 = arith.constant 0 : i32
    %c0_i32_1 = arith.constant 0 : i32
    return %c0_i32, %c0_i32_0 : i32, i32
  }
  func.func @transform_6(%arg0: i32) -> (i32, i32) {
    %c0_i32 = arith.constant 0 : i32
    %c0_i32_0 = arith.constant 0 : i32
    return %c0_i32, %arg0 : i32, i32
  }
}

</mosaic_0001>

<bundles_post_ra>
// kernel: dqn_forward.1
= control target key start
LH: loop header
LB: loop body
LE: loop exit
PB: predicated region body
PF: predicated region fallthrough
CT: control target
= control target key end

     0   :  { %vm131_vm0 = vcmask 1043456   ;;  %vm118_vm1 = vcmask 64512   ;;  %v704_v1 = vmov 0   ;;  %vm280_vm2 = vcmask 523264   ;;  %s875_s0 = inlined_call_operand.vmem [shape: bf16[8,128], index: 0, kind: input, shape index: {}]   ;;  %s876_s1 = inlined_call_operand.vmem [shape: bf16[64,8], index: 1, kind: input, shape index: {}]   ;;  %s877_s5 = inlined_call_operand.vmem [shape: f32[196,1], index: 5, kind: input, shape index: {}]   ;;  %s878_s2 = inlined_call_operand.vmem [shape: bf16[64,64], index: 2, kind: input, shape index: {}]   ;;  %s879_s3 = inlined_call_operand.vmem [shape: bf16[64,64], index: 3, kind: input, shape index: {}]   ;;  %s880_s4 = inlined_call_operand.vmem [shape: bf16[4,64], index: 4, kind: input, shape index: {}]   ;;  %s881_s6 = inlined_call_operand.vmem [shape: f32[4,128], index: 6, kind: output, shape index: {}]  }
   0x1   :  { %v24_v0 = vld [vmem:[%s875_s0] sm:$0xf]  ;;  %690 = vset.pattern.permute.xlu0 %v704_v1  ;;  %691 = vset.pattern.permute.xlu1 %v704_v1  ;;  %v693_v4 = vld [vmem:[%s876_s1 + $0x8] sm:$0xff]   ;;  %v694_v5 = vld [vmem:[%s876_s1 + $0x10] sm:$0xff]   ;;  %vm706_vm3 = vmmov 0  }
   0x2   :  { %686 = vmatprep.subr.msk.bf16.mxu0 %vm131_vm0, %v24_v0  ;;  %v133_v2 = vsel %vm131_vm0, %v24_v0, 0  ;;  %v692_v3 = vld [vmem:[%s876_s1] sm:$0xff]   ;;  %v31_v6 = vld [vmem:[%s877_s5 + $0x30] sm:$0xff]  ;;  %v32_v8 = vld [vmem:[%s877_s5 + $0x38] sm:$0xff] }
   0x3   :  { %633 = vmatpush3.bf16.msra.mxu0 %v133_v2  ;;  %634 = vmatprep.mubr.msk.bf16.mxu0 %vm118_vm1, %v692_v3  ;;  %v29_v7 = vld [vmem:[%s877_s5 + $0x20] sm:$0xff]  ;;  %v30_v9 = vld [vmem:[%s877_s5 + $0x28] sm:$0xff]  ;;  %v695_v10 = vld [vmem:[%s876_s1 + $0x18] sm:$0xff]  }
   0x4   :  { %90 = vperm.xlu0 %690, %v31_v6   ;;  %80 = vperm.xlu1 %691, %v29_v7   ;;  %v27_v11 = vld [vmem:[%s877_s5 + $0x10] sm:$0xff]  ;;  %v28_v12 = vld [vmem:[%s877_s5 + $0x18] sm:$0xff]  ;;  %v25_v13 = vld [vmem:[%s877_s5] sm:$0xff] }
   0x5   :  { %v26_v14 = vld [vmem:[%s877_s5 + $0x8] sm:$0xff]  ;;  %v39_v15 = vld [vmem:[%s877_s5 + $0x70] sm:$0xff]  ;;  %v40_v16 = vld [vmem:[%s877_s5 + $0x78] sm:$0xff] }
   0x6   :  { %635 = vmatmul.mubr.msk.bf16.vlgmr.msra.gmra.mxu0 %vm118_vm1, %v693_v4  ;;  %v37_v17 = vld [vmem:[%s877_s5 + $0x60] sm:$0xff]  ;;  %v38_v18 = vld [vmem:[%s877_s5 + $0x68] sm:$0xff]  ;;  %v35_v19 = vld [vmem:[%s877_s5 + $0x50] sm:$0xff] }
   0x7   :  { %638 = vmatprep.mubr.msk.bf16.mxu0 %vm118_vm1, %v694_v5  ;;  %v36_v20 = vld [vmem:[%s877_s5 + $0x58] sm:$0xff]  ;;  %v33_v21 = vld [vmem:[%s877_s5 + $0x40] sm:$0xff]  ;;  %v34_v22 = vld [vmem:[%s877_s5 + $0x48] sm:$0xff] }
   0x8   :  { %95 = vperm.xlu0 %690, %v32_v8   ;;  %85 = vperm.xlu1 %691, %v30_v9   ;;  %v47_v23 = vld [vmem:[%s877_s5 + $0xb0] sm:$0xff]  ;;  %v48_v24 = vld [vmem:[%s877_s5 + $0xb8] sm:$0xff]  ;;  %v45_v25 = vld [vmem:[%s877_s5 + $0xa0] sm:$0xff] }
   0x9   :  { %v46_v26 = vld [vmem:[%s877_s5 + $0xa8] sm:$0xff]  ;;  %v43_v27 = vld [vmem:[%s877_s5 + $0x90] sm:$0xff]  ;;  %v44_v28 = vld [vmem:[%s877_s5 + $0x98] sm:$0xff] }
   0xa   :  { %v41_v29 = vld [vmem:[%s877_s5 + $0x80] sm:$0xff]  ;;  %v42_v30 = vld [vmem:[%s877_s5 + $0x88] sm:$0xff]  ;;  %v698_v6 = vld [vmem:[%s878_s2 + $0x10] sm:$0xff]  }
   0xb   :  { %v49_v31 = vld [vmem:[%s877_s5 + $0xc0] sm:$0xf]  ;;  %v697_v5 = vld [vmem:[%s878_s2 + $0x8] sm:$0xff]   ;;  %v699_v7 = vld [vmem:[%s878_s2 + $0x18] sm:$0xff]  }
   0xc   :  { %70 = vperm.xlu0 %690, %v27_v11   ;;  %75 = vperm.xlu1 %691, %v28_v12   ;;  %v696_v32 = vld [vmem:[%s878_s2] sm:$0xff]  }
   0xd   :  { %650 = vmatprep.mubr.msk.bf16.mxu1 %vm280_vm2, %v696_v32  ;;  %v700_v8 = vld [vmem:[%s879_s3] sm:$0xff]  }
   0xe   :  { %639 = vmatmul.mubr.msk.bf16.gmra.mxu0 %vm118_vm1, %v695_v10 }
   0xf   :  { %666 = vmatprep.mubr.msk.bf16.mxu0 %vm280_vm2, %v700_v8 }
  0x10   :  { %60 = vperm.xlu0 %690, %v25_v13   ;;  %65 = vperm.xlu1 %691, %v26_v14  }
  0x14   :  { %252 = vperm.xlu0 %690, %v39_v15   ;;  %257 = vperm.xlu1 %691, %v40_v16  }
  0x18   :  { %242 = vperm.xlu0 %690, %v37_v17   ;;  %247 = vperm.xlu1 %691, %v38_v18  }
  0x1c   :  { %232 = vperm.xlu0 %690, %v35_v19   ;;  %237 = vperm.xlu1 %691, %v36_v20  }
  0x20   :  { %222 = vperm.xlu0 %690, %v33_v21   ;;  %227 = vperm.xlu1 %691, %v34_v22  }
  0x24   :  { %410 = vperm.xlu0 %690, %v47_v23   ;;  %415 = vperm.xlu1 %691, %v48_v24  }
  0x28   :  { %400 = vperm.xlu0 %690, %v45_v25   ;;  %405 = vperm.xlu1 %691, %v46_v26  }
  0x2c   :  { %390 = vperm.xlu0 %690, %v43_v27   ;;  %395 = vperm.xlu1 %691, %v44_v28  }
  0x30   :  { %380 = vperm.xlu0 %690, %v41_v29   ;;  %385 = vperm.xlu1 %691, %v42_v30  }
  0x34   :  { %530 = vperm.xlu0 %690, %v49_v31  }
  0x7f   :  { %v81_v33 = vpop.permute.xlu1 %80  ;;  %v91_v35 = vpop.permute.xlu0 %90 }
  0x83   :  { %v86_v38 = vpop.permute.xlu1 %85  ;;  %v96_v40 = vpop.permute.xlu0 %95 }
  0x87   :  { %v76_v44 = vpop.permute.xlu1 %75  ;;  %v71_v48 = vpop.permute.xlu0 %70 }
  0x8b   :  { %v66_v58 = vpop.permute.xlu1 %65  ;;  %v61_v62 = vpop.permute.xlu0 %60 }
  0x8f   :  { %v258_v9 = vpop.permute.xlu1 %257  ;;  %v253_v11 = vpop.permute.xlu0 %252 }
  0x93   :  { %v248_v14 = vpop.permute.xlu1 %247  ;;  %v243_v16 = vpop.permute.xlu0 %242 }
  0x97   :  { %v238_v20 = vpop.permute.xlu1 %237  ;;  %v233_v24 = vpop.permute.xlu0 %232 }
  0xc6   :  { %v636_v34 = vpop.f32.mrf.mxu0 }
  0xc7   :  { %v178_v54 = vadd.f32 %v636_v34, %v71_v48  ;;  %v228_v34 = vpop.permute.xlu1 %227  ;;  %v705_v48 = vmov 0.0  }
  0xc8   :  { %v169_v36 = vpop.f32.mrf.mxu0 }
  0xc9   :  { %v202_v63 = vmax.f32 %v178_v54, 0.0  ;;  %v170_v0 = vadd.f32 %v169_v36, %v61_v62 }
  0xca   :  { %v637_v37 = vpop.f32.mrf.mxu0 }
  0xcb   :  { %v181_v50 = vadd.f32 %v637_v37, %v76_v44  ;;  %v200_v3 = vmax.f32 %v170_v0, 0.0 }
  0xcc   :  { %v172_v39 = vpop.f32.mrf.mxu0 }
  0xcd   :  { %v203_v59 = vmax.f32 %v181_v50, 0.0  ;;  %v173_v60 = vadd.f32 %v172_v39, %v66_v58  ;;  %v416_v50 = vpop.permute.xlu1 %415 }
  0xce   :  { %v640_v41 = vpop.f32.mrf.mxu0 }
  0xcf   :  { %v194_v43 = vadd.f32 %v640_v41, %v91_v35  ;;  %v209_v1 = vpack.c.bf16 %v203_v59, %v202_v63  ;;  %v201_v2 = vmax.f32 %v173_v60, 0.0 }
  0xd0   :  { %v185_v42 = vpop.f32.mrf.mxu0 }
  0xd1   :  { %v186_v46 = vadd.f32 %v185_v42, %v81_v33  ;;  %v206_v51 = vmax.f32 %v194_v43, 0.0  ;;  %v208_v4 = vpack.c.bf16 %v201_v2, %v200_v3 }
  0xd2   :  { %v641_v45 = vpop.f32.mrf.mxu0 }
  0xd3   :  { %v197_v47 = vadd.f32 %v641_v45, %v96_v40  ;;  %v204_v55 = vmax.f32 %v186_v46, 0.0  ;;  %v701_v45 = vld [vmem:[%s879_s3 + $0x8] sm:$0xff]   ;;  %v702_v46 = vld [vmem:[%s879_s3 + $0x10] sm:$0xff]  }
  0xd4   :  { %v188_v49 = vpop.f32.mrf.mxu0 }
  0xd5   :  { %v207_v52 = vmax.f32 %v197_v47, 0.0  ;;  %v189_v53 = vadd.f32 %v188_v49, %v86_v38  ;;  %v223_v38 = vpop.permute.xlu0 %222  ;;  %v703_v47 = vld [vmem:[%s879_s3 + $0x18] sm:$0xff]  }
  0xd7   :  { %v205_v56 = vmax.f32 %v189_v53, 0.0  ;;  %v211_v57 = vpack.c.bf16 %v207_v52, %v206_v51 }
  0xd9   :  { %v210_v61 = vpack.c.bf16 %v205_v56, %v204_v55  ;;  %642 = vmatprep.subr.bf16.mxu1 %v211_v57  ;;  %v411_v52 = vpop.permute.xlu0 %410  ;;  %v406_v55 = vpop.permute.xlu1 %405 }
  0xda   :  { %643 = vmatpush3.bf16.msra.mxu1 %v211_v57 }
  0xdb   :  { %644 = vmatprep.subr.bf16.mxu1 %v210_v61 }
  0xdd   :  { %v401_v57 = vpop.permute.xlu0 %400  ;;  %v396_v62 = vpop.permute.xlu1 %395 }
  0xde   :  { %645 = vmatpush3.bf16.msra.mxu1 %v210_v61 }
  0xdf   :  { %646 = vmatprep.subr.bf16.mxu1 %v209_v1 }
  0xe2   :  { %647 = vmatpush3.bf16.msra.mxu1 %v209_v1 }
  0xe3   :  { %648 = vmatprep.subr.bf16.mxu1 %v208_v4 }
  0xe6   :  { %649 = vmatpush3.bf16.msra.mxu1 %v208_v4  ;;  %v391_v4 = vpop.permute.xlu0 %390 }
  0xe7   :  { %674 = vmatprep.subr.bf16.mxu1 %v705_v48 }
  0xe9   :  { %651 = vmatmul.mubr.msk.bf16.vlgmr.msra.gmra.mxu1 %vm280_vm2, %v697_v5 }
  0xea   :  { %654 = vmatprep.mubr.msk.bf16.mxu1 %vm280_vm2, %v698_v6 }
  0xf1   :  { %655 = vmatmul.mubr.msk.bf16.gmra.mxu1 %vm280_vm2, %v699_v7 }
  0xf2   :  { %682 = vmatprep.mubr.msk.bf16.mxu1 %vm706_vm3, %v705_v48 }
 0x1a9   :  { %v652_v10 = vpop.f32.mrf.mxu1 }
 0x1aa   :  { %v336_v30 = vadd.f32 %v652_v10, %v233_v24  ;;  %v386_v10 = vpop.permute.xlu1 %385 }
 0x1ab   :  { %v327_v12 = vpop.f32.mrf.mxu1 }
 0x1ac   :  { %v360_v39 = vmax.f32 %v336_v30, 0.0  ;;  %v328_v40 = vadd.f32 %v327_v12, %v223_v38 }
 0x1ad   :  { %v653_v13 = vpop.f32.mrf.mxu1 }
 0x1ae   :  { %v339_v26 = vadd.f32 %v653_v13, %v238_v20  ;;  %v358_v43 = vmax.f32 %v328_v40, 0.0 }
 0x1af   :  { %v330_v15 = vpop.f32.mrf.mxu1 }
 0x1b0   :  { %v361_v35 = vmax.f32 %v339_v26, 0.0  ;;  %v331_v36 = vadd.f32 %v330_v15, %v228_v34 }
 0x1b1   :  { %v656_v17 = vpop.f32.mrf.mxu1 }
 0x1b2   :  { %v352_v19 = vadd.f32 %v656_v17, %v253_v11  ;;  %v367_v41 = vpack.c.bf16 %v361_v35, %v360_v39  ;;  %v359_v42 = vmax.f32 %v331_v36, 0.0 }
 0x1b3   :  { %v343_v18 = vpop.f32.mrf.mxu1 }
 0x1b4   :  { %v344_v22 = vadd.f32 %v343_v18, %v243_v16  ;;  %v364_v27 = vmax.f32 %v352_v19, 0.0  ;;  %v366_v44 = vpack.c.bf16 %v359_v42, %v358_v43 }
 0x1b5   :  { %v657_v21 = vpop.f32.mrf.mxu1 }
 0x1b6   :  { %v355_v23 = vadd.f32 %v657_v21, %v258_v9  ;;  %v362_v31 = vmax.f32 %v344_v22, 0.0  ;;  %v527_v21 = vld [vmem:[%s880_s4] sm:$0x3] }
 0x1b7   :  { %v346_v25 = vpop.f32.mrf.mxu1 }
 0x1b8   :  { %v365_v28 = vmax.f32 %v355_v23, 0.0  ;;  %v347_v29 = vadd.f32 %v346_v25, %v248_v14  ;;  %v381_v14 = vpop.permute.xlu0 %380 }
 0x1ba   :  { %v369_v32 = vpack.c.bf16 %v365_v28, %v364_v27  ;;  %v363_v33 = vmax.f32 %v347_v29, 0.0 }
 0x1bc   :  { %v368_v37 = vpack.c.bf16 %v363_v33, %v362_v31  ;;  %658 = vmatprep.subr.bf16.mxu0 %v369_v32  ;;  %v531_v22 = vpop.permute.xlu0 %530 }
 0x1bd   :  { %659 = vmatpush3.bf16.msra.mxu0 %v369_v32 }
 0x1be   :  { %660 = vmatprep.subr.bf16.mxu0 %v368_v37 }
 0x1c1   :  { %661 = vmatpush3.bf16.msra.mxu0 %v368_v37 }
 0x1c2   :  { %662 = vmatprep.subr.bf16.mxu0 %v367_v41 }
 0x1c5   :  { %663 = vmatpush3.bf16.msra.mxu0 %v367_v41 }
 0x1c6   :  { %664 = vmatprep.subr.bf16.mxu0 %v366_v44 }
 0x1c9   :  { %665 = vmatpush3.bf16.msra.mxu0 %v366_v44 }
 0x1cc   :  { %667 = vmatmul.mubr.msk.bf16.vlgmr.msra.gmra.mxu0 %vm280_vm2, %v701_v45 }
 0x1cd   :  { %670 = vmatprep.mubr.msk.bf16.mxu0 %vm280_vm2, %v702_v46 }
 0x1d4   :  { %671 = vmatmul.mubr.msk.bf16.gmra.mxu0 %vm280_vm2, %v703_v47 }
 0x28c   :  { %v668_v49 = vpop.f32.mrf.mxu0 }
 0x28d   :  { %v493_v8 = vadd.f32 %v668_v49, %v391_v4 }
 0x28e   :  { %v484_v51 = vpop.f32.mrf.mxu0 }
 0x28f   :  { %v517_v15 = vmax.f32 %v493_v8, 0.0  ;;  %v485_v16 = vadd.f32 %v484_v51, %v381_v14 }
 0x290   :  { %v669_v53 = vpop.f32.mrf.mxu0 }
 0x291   :  { %v496_v5 = vadd.f32 %v669_v53, %v396_v62  ;;  %v515_v19 = vmax.f32 %v485_v16, 0.0 }
 0x292   :  { %v487_v54 = vpop.f32.mrf.mxu0 }
 0x293   :  { %v518_v11 = vmax.f32 %v496_v5, 0.0  ;;  %v488_v12 = vadd.f32 %v487_v54, %v386_v10 }
 0x294   :  { %v672_v56 = vpop.f32.mrf.mxu0 }
 0x295   :  { %v509_v59 = vadd.f32 %v672_v56, %v411_v52  ;;  %v524_v17 = vpack.c.bf16 %v518_v11, %v517_v15  ;;  %v516_v18 = vmax.f32 %v488_v12, 0.0 }
 0x296   :  { %v500_v58 = vpop.f32.mrf.mxu0 }
 0x297   :  { %v521_v0 = vmax.f32 %v509_v59, 0.0  ;;  %v501_v1 = vadd.f32 %v500_v58, %v401_v57  ;;  %v523_v20 = vpack.c.bf16 %v516_v18, %v515_v19 }
 0x298   :  { %v673_v60 = vpop.f32.mrf.mxu0 }
 0x299   :  { %v512_v61 = vadd.f32 %v673_v60, %v416_v50  ;;  %v519_v9 = vmax.f32 %v501_v1, 0.0 }
 0x29a   :  { %v503_v63 = vpop.f32.mrf.mxu0 }
 0x29b   :  { %v522_v2 = vmax.f32 %v512_v61, 0.0  ;;  %v504_v3 = vadd.f32 %v503_v63, %v406_v55 }
 0x29d   :  { %v526_v6 = vpack.c.bf16 %v522_v2, %v521_v0  ;;  %v520_v7 = vmax.f32 %v504_v3, 0.0 }
 0x29f   :  { %675 = vmatpush3.bf16.msra.mxu1 %v526_v6  ;;  %v525_v13 = vpack.c.bf16 %v520_v7, %v519_v9 }
 0x2a0   :  { %676 = vmatprep.subr.bf16.mxu1 %v705_v48 }
 0x2a3   :  { %677 = vmatpush3.bf16.msra.mxu1 %v525_v13 }
 0x2a4   :  { %678 = vmatprep.subr.bf16.mxu1 %v705_v48 }
 0x2a7   :  { %679 = vmatpush3.bf16.msra.mxu1 %v524_v17 }
 0x2a8   :  { %680 = vmatprep.subr.bf16.mxu1 %v705_v48 }
 0x2ab   :  { %681 = vmatpush3.bf16.msra.mxu1 %v523_v20 }
 0x2ae   :  { %683 = vmatmul.mubr.msk.bf16.vlgmr.msra.gmra.mxu1 %vm280_vm2, %v527_v21 }
 0x36e   :  { %v570_v23 = vpop.f32.mrf.mxu1 }
 0x36f   :  { %v571_v24 = vadd.f32 %v570_v23, %v531_v22 }
 0x370   :  { %v684_v25 = vpop.f32.mrf.mxu1 }
 0x371   :  { %576 = vst [vmem:[%s881_s6] sm:$0xf] %v571_v24 }
 0x372   :  { %v573_v26 = vpop.f32.mrf.mxu1 }
 0x374   :  { %v685_v27 = vpop.f32.mrf.mxu1 }

</bundles_post_ra>
